<compile_context>
chip_gen: v7x
topology: tpu7x:2x2x1
jax: 0.10.0
libtpu: 0.0.40
codegen_flags: <defaults>
</compile_context>

<pallas_src>
import math
import numpy as np
import jax
import jax.numpy as jnp
from jax import lax
from jax.experimental import pallas as pl
from jax.experimental.pallas import tpu as pltpu

F = 32             # fourier features == hidden width (layers[0])
QP_SUB = 8         # q*p (=6) output rows zero-padded to 8 sublanes
LN_EPS = 1e-5      # torch.nn.LayerNorm default
SQRT2 = math.sqrt(2.0)
W_ROWS = 3 * F + QP_SUB    # 104: [fourier | w1^T | w2'^T | w3'^T]
B_ROWS = 2 * F + QP_SUB    # 72 : [b1 | b2' | b3'] as a column
MAX_TM = 256       # lane-tile cap: 3 live (32, 256) f32 intermediates = 24 vregs


def _silu(x):
    return x * jax.nn.sigmoid(x)


def _ln_norm(x):
    """LayerNorm over the feature axis (axis 0 in feature-major), affine folded out."""
    mu = jnp.mean(x, axis=0, keepdims=True)
    var = jnp.mean(jnp.square(x - mu), axis=0, keepdims=True)
    return (x - mu) * lax.rsqrt(var + LN_EPS)


def _kr_kernel(x_ref, w_ref, b_ref, o_ref):
    # x_ref : (F, TM)      f32 feature-major coords; rows 0-1 = x, row 2 = 1.0 (rot bias)
    # w_ref : (W_ROWS, F)  f32 weight slab [fourier(32) | w1^T(32) | w2'^T(32) | w3'^T(8)]
    # b_ref : (B_ROWS, 1)  f32 bias column [b1(32) | b2'(32) | b3'(8)]
    # o_ref : (QP_SUB, TM) f32 lane-dense transposed output tile
    xt = x_ref[...]

    fourier = w_ref[0:F, :]                 # (F, F): [:, 0:2]=omega^T, [:, 2]=rot
    w1t = w_ref[F:2 * F, :]                 # (F, F)
    w2t = w_ref[2 * F:3 * F, :]             # (F, F), LN affine folded in
    w3t = w_ref[3 * F:3 * F + QP_SUB, :]    # (QP_SUB, F), LN affine & 1/sqrt(p) folded in

    b1 = b_ref[0:F, :]                      # (F, 1)
    b2 = b_ref[F:2 * F, :]                  # (F, 1)
    b3 = b_ref[2 * F:2 * F + QP_SUB, :]     # (QP_SUB, 1)

    # FourierFeatures: cos(omega^T x + rot) * sqrt(2)   (rot rides the matmul)
    feat = jnp.cos(jnp.dot(fourier, xt, preferred_element_type=jnp.float32)) * SQRT2

    # SkipLayer (no norm): silu(W1 x + b1) + x
    h = _silu(jnp.dot(w1t, feat, preferred_element_type=jnp.float32) + b1) + feat

    # SkipLayer (with norm): silu(W2' LNnorm(x) + b2') + x
    z = _ln_norm(h)
    h = _silu(jnp.dot(w2t, z, preferred_element_type=jnp.float32) + b2) + h

    # Final LayerNorm + Linear(F -> q*p), emitted transposed & lane-dense
    z = _ln_norm(h)
    o_ref[...] = jnp.dot(w3t, z, preferred_element_type=jnp.float32) + b3


def _choose_tiles(n):
    """Lane tile TM and padded point count N_pad, both multiples of 128."""
    n128 = ((n + 127) // 128) * 128
    if n128 <= MAX_TM:
        tm = max(128, n128)
        return tm, tm
    return MAX_TM, ((n + MAX_TM - 1) // MAX_TM) * MAX_TM


def _pack_params(omega, rot, fcnn_params, q, p):
    """Pack shared Fourier + per-dim FCNN params into per-dim feature-major slabs.

    LayerNorm affines, the Fourier rotation, and 1/sqrt(p) are folded in here
    (host side, exact math) so the kernel only does matmul / cos / silu / rsqrt.
    """
    qp = q * p
    inv_sqrt_p = 1.0 / math.sqrt(p)

    # Shared Fourier matrix: rows = features, cols = [x0, x1, 1(rot), 0 ...]
    fourier = jnp.zeros((F, F), jnp.float32)
    fourier = fourier.at[:, 0:2].set(omega.T)
    fourier = fourier.at[:, 2].set(rot)

    w_slabs, b_slabs = [], []
    for fp in fcnn_params:
        w1t = fp["w1"].T                                              # (F, F)
        w2t = (fp["g2"][:, None] * fp["w2"]).T                        # LN affine folded
        w3t = jnp.zeros((QP_SUB, F), jnp.float32).at[:qp, :].set(
            (fp["g3"][:, None] * fp["w3"] * inv_sqrt_p).T)            # + 1/sqrt(p)
        w_slabs.append(jnp.concatenate([fourier, w1t, w2t, w3t], axis=0))

        b1 = fp["b1"]
        b2 = fp["b2"] + fp["be2"] @ fp["w2"]
        b3 = jnp.zeros((QP_SUB,), jnp.float32).at[:qp].set(
            (fp["b3"] + fp["be3"] @ fp["w3"]) * inv_sqrt_p)
        b_slabs.append(jnp.concatenate([b1, b2, b3])[:, None])        # (B_ROWS, 1)

    return jnp.stack(w_slabs), jnp.stack(b_slabs)


def nn_khatri_rao_forward(wq_grid, cart_grid, omega, rot, fcnn_params, q, p):
    """Mirrors NNKhatriRaoKernel.forward: returns list of [q, p, n_bar, n_bar]."""
    d = len(fcnn_params)
    qp = q * p
    Ns = [int(x.shape[0]) for x in cart_grid]
    N_max = max(Ns)
    TM, N_pad = _choose_tiles(N_max)
    n_row = N_pad // TM

    # Feature-major, zero-padded coordinates: (d, F, N_pad); row 2 = 1.0 (rot bias).
    x_stack = jnp.zeros((d, F, N_pad), jnp.float32)
    for j in range(d):
        x_stack = x_stack.at[j, 0:2, :Ns[j]].set(cart_grid[j].T)
    x_stack = x_stack.at[:, 2, :].set(1.0)

    w_slab, b_slab = _pack_params(omega, rot, fcnn_params, q, p)

    # Advisory cost estimate (4 matmuls; cos + 2*sigmoid + 2*rsqrt per point).
    flops = int(d * N_pad * 2 * (3 * F * F + QP_SUB * F))
    transcendentals = int(d * N_pad * (3 * F + 2))
    bytes_accessed = int(4 * (x_stack.size + w_slab.size + b_slab.size
                              + d * QP_SUB * N_pad))

    row_x = lambda j, i: (j, 0, i)      # per-dim, lane-tiled feature-major coords
    rep = lambda j, i: (j, 0, 0)        # per-dim resident parameter slabs
    out_map = lambda j, i: (j, 0, i)    # per-dim, lane-tiled transposed output

    out = pl.pallas_call(
        _kr_kernel,
        out_shape=jax.ShapeDtypeStruct((d, QP_SUB, N_pad), jnp.float32),
        grid=(d, n_row),
        in_specs=[
            pl.BlockSpec((pl.Squeezed(), F, TM), row_x),
            pl.BlockSpec((pl.Squeezed(), W_ROWS, F), rep),
            pl.BlockSpec((pl.Squeezed(), B_ROWS, 1), rep),
        ],
        out_specs=pl.BlockSpec((pl.Squeezed(), QP_SUB, TM), out_map),
        compiler_params=pltpu.CompilerParams(
            dimension_semantics=("parallel", "parallel")),
        cost_estimate=pl.CostEstimate(flops=flops,
                                      transcendentals=transcendentals,
                                      bytes_accessed=bytes_accessed),
    )(x_stack, w_slab, b_slab)

    # Output is already (q*p, N): slice + reshape (plain-JAX glue).
    K_xx = []
    for j in range(d):
        n_bar = int(wq_grid[j].shape[0])
        K_xx.append(out[j, :qp, :Ns[j]].reshape(q, p, n_bar, n_bar))
    return K_xx
    # TODO(synk): stationary_kernel=True branch (RBF/Matern additive covariances)
    # is disabled in this config and not implemented here.


def init_params(key, d, q, p):
    """Deterministic synthetic init: shared FourierFeatures + per-dim FCNN (torch shapes)."""
    qp = q * p
    kf, kr, *kd = jax.random.split(key, 2 + d)
    omega = jax.random.normal(kf, (2, F), jnp.float32) * (2.0 * math.pi)
    rot = jax.random.uniform(kr, (F,), dtype=jnp.float32) * (2.0 * math.pi)

    def lin_w(k, fin, fout):
        return jax.random.normal(k, (fin, fout), jnp.float32) / math.sqrt(fin)

    fcnn = []
    for j in range(d):
        ks = jax.random.split(kd[j], 6)
        fcnn.append(dict(
            w1=lin_w(ks[0], F, F),
            b1=jax.random.normal(ks[1], (F,), jnp.float32) * 0.01,
            g2=jnp.ones((F,), jnp.float32), be2=jnp.zeros((F,), jnp.float32),
            w2=lin_w(ks[2], F, F),
            b2=jax.random.normal(ks[3], (F,), jnp.float32) * 0.01,
            g3=jnp.ones((F,), jnp.float32), be3=jnp.zeros((F,), jnp.float32),
            w3=lin_w(ks[4], F, qp),
            b3=jax.random.normal(ks[5], (qp,), jnp.float32) * 0.01,
        ))
    return omega, rot, fcnn


def _layernorm_ref(x, g, b):
    mu = jnp.mean(x, axis=-1, keepdims=True)
    var = jnp.mean(jnp.square(x - mu), axis=-1, keepdims=True)
    return (x - mu) * lax.rsqrt(var + LN_EPS) * g + b


def reference_per_dim(x, omega, rot, fp, q, p):
    """Pure-JAX f32 reference of the same forward (unfolded params)."""
    feat = jnp.cos(x @ omega + rot) * SQRT2
    h = _silu(feat @ fp["w1"] + fp["b1"]) + feat
    z = _layernorm_ref(h, fp["g2"], fp["be2"])
    h = _silu(z @ fp["w2"] + fp["b2"]) + h
    z = _layernorm_ref(h, fp["g3"], fp["be3"])
    return (z @ fp["w3"] + fp["b3"]) / math.sqrt(p)


if __name__ == "__main__":
    d, q, p = 2, 2, 3
    n_bar = 8
    key = jax.random.PRNGKey(0)
    kparam, _ = jax.random.split(key)
    omega, rot, fcnn = init_params(kparam, d, q, p)

    wq_grid, cart_grid = [], []
    for j in range(d):
        pts = jnp.linspace(0.0, 1.0, n_bar).astype(jnp.float32)
        wq_grid.append(jnp.full((n_bar,), 1.0 / n_bar, jnp.float32))   # quadrature weights
        xa, xb = jnp.meshgrid(pts, pts, indexing="ij")                 # torch.cartesian_prod order
        cart_grid.append(jnp.stack([xa.ravel(), xb.ravel()], axis=-1).astype(jnp.float32))

    K_xx = nn_khatri_rao_forward(wq_grid, cart_grid, omega, rot, fcnn, q, p)
    K_xx = [jax.block_until_ready(K) for K in K_xx]

    assert all(K.shape == (q, p, n_bar, n_bar) for K in K_xx)

    ok = True
    for j in range(d):
        ref = reference_per_dim(cart_grid[j], omega, rot, fcnn[j], q, p)
        ref = ref.T.reshape(q, p, n_bar, n_bar)
        if not np.allclose(np.asarray(K_xx[j]), np.asarray(ref), atol=1e-4, rtol=1e-3):
            ok = False

    if ok:
        print("KERNEL_OK")
    else:
        print("MISMATCH")
</pallas_src>

<mosaic_0001>
module attributes {stable_mosaic.version = 11 : i64} {
  func.func @_kr_kernel(%arg0: i32, %arg1: i32, %arg2: memref<1x32x128xf32, #tpu.memory_space<vmem>>, %arg3: memref<1x104x32xf32, #tpu.memory_space<vmem>>, %arg4: memref<1x72x1xf32, #tpu.memory_space<vmem>>, %arg5: memref<1x8x128xf32, #tpu.memory_space<vmem>>) attributes {dimension_semantics = [#tpu.dimension_semantics<parallel>, #tpu.dimension_semantics<parallel>], iteration_bounds = array<i64: 2, 1>, scalar_prefetch = 0 : i64, scratch_operands = 0 : i64, tpu.core_type = #tpu.core_type<tc>, window_params = [{transform_indices = @transform_0, window_bounds = array<i64: 1, 32, 128>}, {transform_indices = @transform_1, window_bounds = array<i64: 1, 104, 32>}, {transform_indices = @transform_2, window_bounds = array<i64: 1, 72, 1>}, {transform_indices = @transform_3, window_bounds = array<i64: 1, 8, 128>}]} {
    %c0 = arith.constant 0 : index
    %c0_0 = arith.constant 0 : index
    %c0_1 = arith.constant 0 : index
    %0 = vector.load %arg2[%c0, %c0_0, %c0_1] : memref<1x32x128xf32, #tpu.memory_space<vmem>>, vector<1x32x128xf32>
    %1 = vector.shape_cast %0 : vector<1x32x128xf32> to vector<32x128xf32>
    %c0_2 = arith.constant 0 : index
    %c0_3 = arith.constant 0 : index
    %c0_4 = arith.constant 0 : index
    %2 = vector.load %arg3[%c0_2, %c0_3, %c0_4] : memref<1x104x32xf32, #tpu.memory_space<vmem>>, vector<1x32x32xf32>
    %3 = vector.shape_cast %2 : vector<1x32x32xf32> to vector<32x32xf32>
    %c0_5 = arith.constant 0 : index
    %c32 = arith.constant 32 : index
    %c0_6 = arith.constant 0 : index
    %4 = vector.load %arg3[%c0_5, %c32, %c0_6] : memref<1x104x32xf32, #tpu.memory_space<vmem>>, vector<1x32x32xf32>
    %5 = vector.shape_cast %4 : vector<1x32x32xf32> to vector<32x32xf32>
    %c0_7 = arith.constant 0 : index
    %c64 = arith.constant 64 : index
    %c0_8 = arith.constant 0 : index
    %6 = vector.load %arg3[%c0_7, %c64, %c0_8] : memref<1x104x32xf32, #tpu.memory_space<vmem>>, vector<1x32x32xf32>
    %7 = vector.shape_cast %6 : vector<1x32x32xf32> to vector<32x32xf32>
    %c0_9 = arith.constant 0 : index
    %c96 = arith.constant 96 : index
    %c0_10 = arith.constant 0 : index
    %8 = vector.load %arg3[%c0_9, %c96, %c0_10] : memref<1x104x32xf32, #tpu.memory_space<vmem>>, vector<1x8x32xf32>
    %9 = vector.shape_cast %8 : vector<1x8x32xf32> to vector<8x32xf32>
    %c0_11 = arith.constant 0 : index
    %c0_12 = arith.constant 0 : index
    %c0_13 = arith.constant 0 : index
    %10 = vector.load %arg4[%c0_11, %c0_12, %c0_13] : memref<1x72x1xf32, #tpu.memory_space<vmem>>, vector<1x32x1xf32>
    %11 = vector.shape_cast %10 : vector<1x32x1xf32> to vector<32x1xf32>
    %c0_14 = arith.constant 0 : index
    %c32_15 = arith.constant 32 : index
    %c0_16 = arith.constant 0 : index
    %12 = vector.load %arg4[%c0_14, %c32_15, %c0_16] : memref<1x72x1xf32, #tpu.memory_space<vmem>>, vector<1x32x1xf32>
    %13 = vector.shape_cast %12 : vector<1x32x1xf32> to vector<32x1xf32>
    %c0_17 = arith.constant 0 : index
    %c64_18 = arith.constant 64 : index
    %c0_19 = arith.constant 0 : index
    %14 = vector.load %arg4[%c0_17, %c64_18, %c0_19] : memref<1x72x1xf32, #tpu.memory_space<vmem>>, vector<1x8x1xf32>
    %15 = vector.shape_cast %14 : vector<1x8x1xf32> to vector<8x1xf32>
    %cst = arith.constant dense<0.000000e+00> : vector<32x128xf32>
    %16 = tpu.matmul %3, %1, %cst {dimension_numbers = #tpu.dot_dimension_numbers<[1], [0], [0], [1], [0, 0, 1, 1], [], []>} : vector<32x32xf32>, vector<32x128xf32>, vector<32x128xf32> -> vector<32x128xf32>
    %17 = math.cos %16 : vector<32x128xf32>
    %cst_20 = arith.constant 1.41421354 : f32
    %18 = vector.broadcast %cst_20 : f32 to vector<32x128xf32>
    %19 = arith.mulf %17, %18 : vector<32x128xf32>
    %cst_21 = arith.constant dense<0.000000e+00> : vector<32x128xf32>
    %20 = tpu.matmul %5, %19, %cst_21 {dimension_numbers = #tpu.dot_dimension_numbers<[1], [0], [0], [1], [0, 0, 1, 1], [], []>} : vector<32x32xf32>, vector<32x128xf32>, vector<32x128xf32> -> vector<32x128xf32>
    %21 = vector.broadcast %11 : vector<32x1xf32> to vector<32x128xf32>
    %22 = arith.addf %20, %21 : vector<32x128xf32>
    %23 = arith.negf %22 : vector<32x128xf32>
    %24 = math.exp %23 : vector<32x128xf32>
    %cst_22 = arith.constant 1.000000e+00 : f32
    %25 = vector.broadcast %cst_22 : f32 to vector<32x128xf32>
    %26 = arith.addf %25, %24 : vector<32x128xf32>
    %27 = arith.divf %25, %26 : vector<32x128xf32>
    %28 = arith.mulf %22, %27 : vector<32x128xf32>
    %29 = arith.addf %28, %19 : vector<32x128xf32>
    %cst_23 = arith.constant dense<0.000000e+00> : vector<128xf32>
    %30 = vector.multi_reduction <add>, %29, %cst_23 [0] : vector<32x128xf32> to vector<128xf32>
    %31 = vector.shape_cast %30 : vector<128xf32> to vector<1x128xf32>
    %cst_24 = arith.constant 3.200000e+01 : f32
    %32 = vector.broadcast %cst_24 : f32 to vector<1x128xf32>
    %33 = arith.divf %31, %32 : vector<1x128xf32>
    %34 = vector.broadcast %33 : vector<1x128xf32> to vector<32x128xf32>
    %35 = arith.subf %29, %34 : vector<32x128xf32>
    %36 = arith.mulf %35, %35 : vector<32x128xf32>
    %cst_25 = arith.constant dense<0.000000e+00> : vector<128xf32>
    %37 = vector.multi_reduction <add>, %36, %cst_25 [0] : vector<32x128xf32> to vector<128xf32>
    %38 = vector.shape_cast %37 : vector<128xf32> to vector<1x128xf32>
    %cst_26 = arith.constant 3.200000e+01 : f32
    %39 = vector.broadcast %cst_26 : f32 to vector<1x128xf32>
    %40 = arith.divf %38, %39 : vector<1x128xf32>
    %41 = vector.broadcast %33 : vector<1x128xf32> to vector<32x128xf32>
    %42 = arith.subf %29, %41 : vector<32x128xf32>
    %cst_27 = arith.constant 9.99999974E-6 : f32
    %43 = vector.broadcast %cst_27 : f32 to vector<1x128xf32>
    %44 = arith.addf %40, %43 : vector<1x128xf32>
    %45 = math.rsqrt %44 : vector<1x128xf32>
    %46 = vector.broadcast %45 : vector<1x128xf32> to vector<32x128xf32>
    %47 = arith.mulf %42, %46 : vector<32x128xf32>
    %cst_28 = arith.constant dense<0.000000e+00> : vector<32x128xf32>
    %48 = tpu.matmul %7, %47, %cst_28 {dimension_numbers = #tpu.dot_dimension_numbers<[1], [0], [0], [1], [0, 0, 1, 1], [], []>} : vector<32x32xf32>, vector<32x128xf32>, vector<32x128xf32> -> vector<32x128xf32>
    %49 = vector.broadcast %13 : vector<32x1xf32> to vector<32x128xf32>
    %50 = arith.addf %48, %49 : vector<32x128xf32>
    %51 = arith.negf %50 : vector<32x128xf32>
    %52 = math.exp %51 : vector<32x128xf32>
    %cst_29 = arith.constant 1.000000e+00 : f32
    %53 = vector.broadcast %cst_29 : f32 to vector<32x128xf32>
    %54 = arith.addf %53, %52 : vector<32x128xf32>
    %55 = arith.divf %53, %54 : vector<32x128xf32>
    %56 = arith.mulf %50, %55 : vector<32x128xf32>
    %57 = arith.addf %56, %29 : vector<32x128xf32>
    %cst_30 = arith.constant dense<0.000000e+00> : vector<128xf32>
    %58 = vector.multi_reduction <add>, %57, %cst_30 [0] : vector<32x128xf32> to vector<128xf32>
    %59 = vector.shape_cast %58 : vector<128xf32> to vector<1x128xf32>
    %cst_31 = arith.constant 3.200000e+01 : f32
    %60 = vector.broadcast %cst_31 : f32 to vector<1x128xf32>
    %61 = arith.divf %59, %60 : vector<1x128xf32>
    %62 = vector.broadcast %61 : vector<1x128xf32> to vector<32x128xf32>
    %63 = arith.subf %57, %62 : vector<32x128xf32>
    %64 = arith.mulf %63, %63 : vector<32x128xf32>
    %cst_32 = arith.constant dense<0.000000e+00> : vector<128xf32>
    %65 = vector.multi_reduction <add>, %64, %cst_32 [0] : vector<32x128xf32> to vector<128xf32>
    %66 = vector.shape_cast %65 : vector<128xf32> to vector<1x128xf32>
    %cst_33 = arith.constant 3.200000e+01 : f32
    %67 = vector.broadcast %cst_33 : f32 to vector<1x128xf32>
    %68 = arith.divf %66, %67 : vector<1x128xf32>
    %69 = vector.broadcast %61 : vector<1x128xf32> to vector<32x128xf32>
    %70 = arith.subf %57, %69 : vector<32x128xf32>
    %cst_34 = arith.constant 9.99999974E-6 : f32
    %71 = vector.broadcast %cst_34 : f32 to vector<1x128xf32>
    %72 = arith.addf %68, %71 : vector<1x128xf32>
    %73 = math.rsqrt %72 : vector<1x128xf32>
    %74 = vector.broadcast %73 : vector<1x128xf32> to vector<32x128xf32>
    %75 = arith.mulf %70, %74 : vector<32x128xf32>
    %cst_35 = arith.constant dense<0.000000e+00> : vector<8x128xf32>
    %76 = tpu.matmul %9, %75, %cst_35 {dimension_numbers = #tpu.dot_dimension_numbers<[1], [0], [0], [1], [0, 0, 1, 1], [], []>} : vector<8x32xf32>, vector<32x128xf32>, vector<8x128xf32> -> vector<8x128xf32>
    %77 = vector.broadcast %15 : vector<8x1xf32> to vector<8x128xf32>
    %78 = arith.addf %76, %77 : vector<8x128xf32>
    %c0_36 = arith.constant 0 : index
    %c0_37 = arith.constant 0 : index
    %c0_38 = arith.constant 0 : index
    %79 = vector.load %arg5[%c0_36, %c0_37, %c0_38] : memref<1x8x128xf32, #tpu.memory_space<vmem>>, vector<1x8x128xf32>
    %80 = vector.shape_cast %79 : vector<1x8x128xf32> to vector<8x128xf32>
    %81 = vector.shape_cast %78 : vector<8x128xf32> to vector<1x8x128xf32>
    tpu.vector_store %arg5[%c0_36, %c0_37, %c0_38], %81 {strides = array<i32>} : memref<1x8x128xf32, #tpu.memory_space<vmem>>, vector<1x8x128xf32>,
    return
  }
  func.func @transform_0(%arg0: i32, %arg1: i32) -> (i32, i32, i32) {
    %c0_i32 = arith.constant 0 : i32
    %c0_i32_0 = arith.constant 0 : i32
    return %arg0, %c0_i32, %arg1 : i32, i32, i32
  }
  func.func @transform_1(%arg0: i32, %arg1: i32) -> (i32, i32, i32) {
    %c0_i32 = arith.constant 0 : i32
    %c0_i32_0 = arith.constant 0 : i32
    %c0_i32_1 = arith.constant 0 : i32
    return %arg0, %c0_i32, %c0_i32_0 : i32, i32, i32
  }
  func.func @transform_2(%arg0: i32, %arg1: i32) -> (i32, i32, i32) {
    %c0_i32 = arith.constant 0 : i32
    %c0_i32_0 = arith.constant 0 : i32
    %c0_i32_1 = arith.constant 0 : i32
    return %arg0, %c0_i32, %c0_i32_0 : i32, i32, i32
  }
  func.func @transform_3(%arg0: i32, %arg1: i32) -> (i32, i32, i32) {
    %c0_i32 = arith.constant 0 : i32
    %c0_i32_0 = arith.constant 0 : i32
    return %arg0, %c0_i32, %arg1 : i32, i32, i32
  }
}

</mosaic_0001>

<bundles_post_ra>
// kernel: tpu_custom_call.1
= control target key start
LH: loop header
LB: loop body
LE: loop exit
PB: predicated region body
PF: predicated region fallthrough
CT: control target
= control target key end

     0   :  { %8 = vsyncpa [#allocation3], 0  ;;  %s2259_s0 = inlined_call_operand.vmem [shape: f32[2,32,128], index: 0, kind: input, shape index: {}]   ;;  %s2260_s1 = inlined_call_operand.vmem [shape: f32[2,104,32], index: 1, kind: input, shape index: {}]   ;;  %s2261_s2 = inlined_call_operand.vmem [shape: f32[2,72,1], index: 2, kind: input, shape index: {}]   ;;  %s2262_s3 = inlined_call_operand.hbm [shape: f32[2,8,128], index: 3, kind: output, shape index: {}]  }
   0x1   :  { %10 = vsyncpa [#allocation3 + $0x1], 0  ;;  %s1745_s12 = smov 0   ;;  %s1747_s13 = smov 0  }
   0x2   :  { %s1749_s14 = smov 0   ;;  %s1751_s15 = smov 0  }
   0x3   :  { %s1753_s16 = smov 0   ;;  %s1755_s17 = smov 0  }
   0x4 LB: > { %s1333_s18 = sadd.s32 4294967295, %s1712_s17   ;;  %s1334_s19 = sadd.s32 4294967294, %s1712_s17   ;;  %s1712_s17 = sphi %s1755_s17, %s16_s17   ;;  %s1708_s16 = sphi %s1753_s16, %s2277_s16   ;;  %s1704_s15 = sphi %s1751_s15, %s2276_s15   ;;  %s1700_s14 = sphi %s1749_s14, %s2275_s14   ;;  %s1696_s13 = sphi %s1747_s13, %s2274_s13   ;;  %s1692_s12 = sphi %s1745_s12, %s2273_s12  }
   0x5   : > { %s28_s20 = sadd.s32 1, %s1708_s16  ;;  %s117_s21 = sadd.s32 1, %s1700_s14 }
   0x6   : > { %p30_p0 = scmp.ge.s32.totalorder %s28_s20, 2  ;;  %p127_p1 = scmp.ne.s32.totalorder %s1700_s14, %s1696_s13 }
   0x7   : > { %p128_p2 = scmp.eq.s32.totalorder %s1333_s18, 1  ;;  %p133_p3 = scmp.ne.s32.totalorder %s1696_s13, %s1692_s12 }
   0x8   : > { %s2279_s20 = smov (%p30_p0, %s28_s20), 0  ;;  %p134_p5 = scmp.eq.s32.totalorder %s1334_s19, 1 }
   0x9   : > { %p1785_p4 = por %p128_p2, %p127_p1  ;;  %s112_s23 = ssub.s32 %s1708_s16, %s2279_s20 }
   0xa   : > { %p1337_p6 = scmp.ge.s32.totalorder %s1712_s17, 1  ;;  %p115_p7 = scmp.eq.s32.totalorder %s112_s23, 0 }
   0xb   : > { %p1792_p8 = por %p134_p5, %p133_p3  ;;  %p179_p9 = scmp.lt.s32.totalorder %s1712_s17, 3 }
   0xc   : > { %s1798_s25 = scalar_select %p115_p7, %s1700_s14, %s117_s21  }
   0xd   : > { %p180_p10 = pnand %p1337_p6, %p179_p9 }
   0xe   : > { %p216_p11 = scmp.lt.s32.totalorder (!%p180_p10), %s1704_s15, 1  ;;  %vm260_vm0 = vcmask (!%p180_p10), 261120   ;;  %v1714_v41 = vmov (!%p180_p10), 683565275   ;;  %v1715_v46 = vmov (!%p180_p10), 2475754826  }
   0xf   : > { %183 = sbr.rel (%p180_p10) target bundleno = 1249 (0x4e1), region = 32  ;;  %v1716_v48 = vmov (!%p180_p10), 2131351028   ;;  %v1717_v50 = vmov (!%p180_p10), 2102212464   ;;  %s213_s18 = sand.u32 (!%p180_p10), 1, %s1696_s13  }
  0x10   : > { %v1718_v52 = vmov (!%p180_p10), 920167782   ;;  %v1719_v59 = vmov (!%p180_p10), 1326507024   ;;  %s1338_s19 = sshll.u32 (!%p180_p10), %s213_s18, 3  ;;  %s1381_s21 = sshll.u32 (!%p180_p10), %s1704_s15, 7 }
  0x11   : > { %s215_s23 = scalar_lea.vmem (!%p180_p10), [#allocation2], %s1338_s19  ;;  %s2212_s29 = scalar_lea.hbm (!%p180_p10), %s2262_s3, %s1381_s21 }
  0x12   : > { %s1221_s30 = scalar_lea.sflag (!%p180_p10), [#allocation3], %s213_s18 }
  0x16   : > { %s1802_s26 = scalar_select %p216_p11, %s1704_s15, 1 }
  0x17   : > { %s1724_s15 = smov [#allocation2]  }
  0x18   : > { %s1384_s27 = sshll.u32 %s1802_s26, 5  ;;  %s1497_s28 = smul.u32 104, %s1802_s26 }
  0x19   : > { %s223_s4 = scalar_lea.vmem %s2259_s0, %s1384_s27  ;;  %s1498_s8 = smul.u32 72, %s1802_s26 }
  0x1a   : > { %s1812_s7 = scalar_lea.vmem %s2260_s1, %s1497_s28  ;;  %v234_v0 = vld [vmem:[%s223_s4] sm:$0xff]  ;;  %v235_v1 = vld [vmem:[%s223_s4 + $0x8] sm:$0xff]  ;;  %v236_v2 = vld [vmem:[%s223_s4 + $0x10] sm:$0xff]  ;;  %s1235_s26 = sshll.u32 %s215_s23, 4  ;;  %s2214_s26 = int_to_ptr.vmem [resolvable:$true] %s1235_s26 }
  0x1b   : > { %v1467_v3 = vpack.c.bf16 %v235_v1, %v234_v0  ;;  %v237_v4 = vld [vmem:[%s223_s4 + $0x18] sm:$0xff]  ;;  %v238_v5 = vld [vmem:[%s1812_s7] sm:$0xff]  ;;  %v239_v7 = vld [vmem:[%s1812_s7 + $0x8] sm:$0xff]  ;;  %s1904_s11 = scalar_lea.vmem %s2261_s2, %s1498_s8  ;;  %s1634_s4 = scalar_lea.vmem %s2214_s26, 128 }
  0x1c   : > { %v1471_v6 = vpack.c.bf16 %v237_v4, %v236_v2  ;;  %1422 = vmatprep.mubr.msk.f32.mxu0 %vm260_vm0, %v238_v5  ;;  %v240_v8 = vld [vmem:[%s1812_s7 + $0x10] sm:$0xff]  ;;  %v241_v9 = vld [vmem:[%s1812_s7 + $0x18] sm:$0xff]  ;;  %v242_v45 = vld [vmem:[%s1812_s7 + $0x20] sm:$0xff]  ;;  %p1635_p12 = scmp.ne.s32.totalorder %s2214_s26, %s1634_s4  ;;  %s1638_s5 = sshll.u32 %s1724_s15, 4  ;;  %s1639_s5 = int_to_ptr.vmem [resolvable:$false] %s1638_s5 }
  0x1d   : > { %1468 = vmatprep.subr.bf16.mxu0 %v1467_v3  ;;  %1436 = vmatprep.mubr.msk.f32.mxu1 %vm260_vm0, %v242_v45  ;;  %s1640_s6 = scalar_lea.vmem %s1639_s5, 256  ;;  %p1641_p1 = scmp.lt.s32.totalorder %s2214_s26, %s1639_s5 }
  0x1e   : > { %1470 = vmatpush3.bf16.msra.mxu0 %v1467_v3  ;;  %p1636_p13 = pnand %p1635_p12, %p1785_p4  ;;  %p1642_p2 = scmp.lt.s32.totalorder %s1640_s6, %s1634_s4 }
  0x1f   : > { %1472 = vmatprep.subr.bf16.mxu0 %v1471_v6 }
  0x20   : > { %p1637_p0 = pneg %p1636_p13  ;;  %p1643_p3 = por %p1642_p2, %p1641_p1 }
  0x22   : > { %1474 = vmatpush3.bf16.msra.mxu0 %v1471_v6  ;;  %p1644_p5 = pnand %p1643_p3, %p1637_p0 }
  0x25   : > { %1423 = vmatmul.mubr.msk.f32.vlgmr.msra.gmra.mrb[0].mxu0 %vm260_vm0, %v239_v7 }
  0x26   : > { %1425 = vmatprep.mubr.msk.f32.mxu0 %vm260_vm0, %v240_v8 }
  0x29   : > { %1426 = vmatmul.mubr.msk.f32.gmra.mrb[2].mxu0 %vm260_vm0, %v241_v9 }
  0xf8   : > { %v1822_v10 = vpop.f32.mrb[0].mxu0 }
  0xf9   : > { %v461_v11 = vand.u32 2147483647, %v1822_v10  ;;  %v464_v12 = vand.u32 2139095040, %v1822_v10  ;;  %v1826_v13 = vpop.f32.mrb[1].mxu0 }
  0xfa   : > { %v358_v14 = vand.u32 2147483647, %v1826_v13  ;;  %v361_v15 = vand.u32 2139095040, %v1826_v13 }
  0xfb   : > { %v465_v16 = vshrl.u32 %v464_v12, 23  ;;  %v468_v17 = vand.u32 8388607, %v461_v11 }
  0xfc   : > { %v362_v18 = vshrl.u32 %v361_v15, 23  ;;  %v365_v19 = vand.u32 8388607, %v358_v14  ;;  %v1834_v20 = vpop.f32.mrb[2].mxu0 }
  0xfd   : > { %v1351_v21 = vadd.s32 4294967169, %v465_v16  ;;  %v1836_v22 = vpop.f32.mrb[3].mxu0  ;;  %v670_v24 = vand.u32 2139095040, %v1834_v20  ;;  %v469_v25 = vor.u32 8388608, %v468_v17  ;;  %v667_v29 = vand.u32 2147483647, %v1834_v20 }
  0xfe   : > { %v1347_v23 = vadd.s32 4294967169, %v362_v18  ;;  %v366_v27 = vor.u32 8388608, %v365_v19 }
  0xff   : > { %v471_v26 = vadd.s32 1, %v1351_v21  ;;  %v671_v30 = vshrl.u32 %v670_v24, 23  ;;  %v1840_v36 = vshll.u32 %v469_v25, 8  ;;  %v1848_v39 = vand.u32 8388607, %v667_v29 }
 0x100   : > { %v368_v28 = vadd.s32 1, %v1347_v23  ;;  %v1844_v38 = vshll.u32 %v366_v27, 8 }
 0x101   : > { %vm472_vm1 = vcmp.gt.s32.totalorder %v471_v26, 0  ;;  %v1359_v32 = vadd.s32 4294967169, %v671_v30 }
 0x102   : > { %v473_v31 = vsel %vm472_vm1, %v471_v26, 0  ;;  %vm369_vm2 = vcmp.gt.s32.totalorder %v368_v28, 0 }
 0x103   : > { %v474_v33 = vshrl.u32 %v473_v31, 5  ;;  %v475_v34 = vand.u32 31, %v473_v31  ;;  %v370_v35 = vsel %vm369_vm2, %v368_v28, 0  ;;  %v1851_v44 = vadd.s32 1, %v1359_v32 }
 0x104   : > { %v1842_v37 = vshrl.u32 %v370_v35, 5  ;;  %v372_v43 = vand.u32 31, %v370_v35 }
 0x105   : > { %v476_v40 = vsub.s32 32, %v475_v34  ;;  %v478_v42 = vshll.u32 %v1714_v41, %v475_v34  ;;  %v481_v47 = vshll.u32 %v1715_v46, %v475_v34  ;;  %v484_v49 = vshll.u32 %v1716_v48, %v475_v34 }
 0x106   : > { %v487_v51 = vshll.u32 %v1717_v50, %v475_v34  ;;  %v490_v53 = vshll.u32 %v1718_v52, %v475_v34  ;;  %vm493_vm3 = vcmp.lt.s32.totalorder %v474_v33, 1  ;;  %vm494_vm4 = vcmp.lt.s32.totalorder %v474_v33, 2 }
 0x107   : > { %v479_v54 = vshrl.u32 %v1715_v46, %v476_v40  ;;  %v482_v55 = vshrl.u32 %v1716_v48, %v476_v40  ;;  %v485_v56 = vshrl.u32 %v1717_v50, %v476_v40  ;;  %v477_v57 = vshrl.u32 %v1714_v41, %v476_v40 }
 0x108   : > { %v488_v58 = vshrl.u32 %v1718_v52, %v476_v40  ;;  %v491_v60 = vshrl.u32 %v1719_v59, %v476_v40  ;;  %v373_v0 = vsub.s32 32, %v372_v43  ;;  %vm495_vm5 = vcmp.lt.s32.totalorder %v474_v33, 3 }
 0x109   : > { %v480_v61 = vor.u32 %v479_v54, %v478_v42  ;;  %v483_v62 = vor.u32 %v482_v55, %v481_v47  ;;  %v486_v63 = vor.u32 %v485_v56, %v484_v49  ;;  %vm496_vm6 = vcmp.lt.s32.totalorder %v474_v33, 4 }
 0x10a   : > { %v489_v1 = vor.u32 %v488_v58, %v487_v51  ;;  %v492_v2 = vor.u32 %v491_v60, %v490_v53  ;;  %v375_v12 = vshll.u32 %v1714_v41, %v372_v43  ;;  %v376_v17 = vshrl.u32 %v1715_v46, %v373_v0 }
 0x10b   : > { %v497_v3 = vsel %vm493_vm3, %v477_v57, %v480_v61  ;;  %v498_v4 = vsel %vm496_vm6, %v486_v63, 2102212464  ;;  %v501_v5 = vsel %vm493_vm3, %v480_v61, %v483_v62  ;;  %v505_v6 = vsel %vm493_vm3, %v483_v62, %v486_v63 }
 0x10c   : > { %v499_v7 = vsel %vm495_vm5, %v483_v62, %v498_v4  ;;  %v502_v8 = vsel %vm496_vm6, %v489_v1, 920167782  ;;  %v506_v9 = vsel %vm496_vm6, %v492_v2, 1326507024  ;;  %v378_v18 = vshll.u32 %v1715_v46, %v372_v43 }
 0x10d   : > { %v503_v15 = vsel %vm495_vm5, %v486_v63, %v502_v8  ;;  %v507_v16 = vsel %vm495_vm5, %v489_v1, %v506_v9  ;;  %v500_v19 = vsel %vm494_vm4, %v497_v3, %v499_v7  ;;  %v379_v24 = vshrl.u32 %v1716_v48, %v373_v0 }
 0x10e   : > { %v504_v21 = vsel %vm494_vm4, %v501_v5, %v503_v15  ;;  %v508_v23 = vsel %vm494_vm4, %v505_v6, %v507_v16  ;;  %v377_v30 = vor.u32 %v376_v17, %v375_v12  ;;  %v381_v32 = vshll.u32 %v1716_v48, %v372_v43 }
 0x10f   : > { %v1876_v25 = vmul.u32.u64.low %v1840_v36, %v508_v23  ;;  %v1877_v26 = vmul.u32.u64.high %v1840_v36, %v508_v23, %v1876_v25  ;;  %v1880_v27 = vmul.u32.u64.low %v1840_v36, %v504_v21  ;;  %v1881_v28 = vmul.u32.u64.high %v1840_v36, %v504_v21, %v1880_v27 }
 0x110   : > { %v380_v31 = vor.u32 %v379_v24, %v378_v18  ;;  %v382_v34 = vshrl.u32 %v1717_v50, %v373_v0  ;;  %v374_v33 = vshrl.u32 %v1714_v41, %v373_v0  ;;  %v384_v35 = vshll.u32 %v1717_v50, %v372_v43  ;;  %v251_v18 = vld [vmem:[%s1904_s11] sm:$0xff] }
 0x111   : > { %v385_v40 = vshrl.u32 %v1718_v52, %v373_v0  ;;  %v388_v42 = vshrl.u32 %v1719_v59, %v373_v0  ;;  %v516_v45 = vmul.u32 %v1840_v36, %v500_v19  ;;  %v387_v49 = vshll.u32 %v1718_v52, %v372_v43  ;;  %v253_v19 = vld [vmem:[%s1904_s11 + $0x10] sm:$0xff] }
 0x112   : > { %v383_v47 = vor.u32 %v382_v34, %v381_v32  ;;  %vm390_vm7 = vcmp.lt.s32.totalorder %v1842_v37, 1  ;;  %vm518_vm8 = vc.u32 %v1877_v26, %v1880_v27  ;;  %v519_v51 = vadd.s32 1, %v1881_v28  ;;  %v252_v34 = vld [vmem:[%s1904_s11 + $0x8] sm:$0xff] }
 0x113   : > { %v386_v53 = vor.u32 %v385_v40, %v384_v35  ;;  %vm391_vm9 = vcmp.lt.s32.totalorder %v1842_v37, 2  ;;  %v389_v54 = vor.u32 %v388_v42, %v387_v49  ;;  %vm392_vm10 = vcmp.lt.s32.totalorder %v1842_v37, 3  ;;  %v254_v42 = vld [vmem:[%s1904_s11 + $0x18] sm:$0xff] }
 0x114   : > { %vm393_vm11 = vcmp.lt.s32.totalorder %v1842_v37, 4  ;;  %v398_v36 = vsel %vm390_vm7, %v377_v30, %v380_v31  ;;  %v520_v55 = vsel %vm518_vm8, %v519_v51, %v1881_v28  ;;  %v402_v57 = vsel %vm390_vm7, %v380_v31, %v383_v47 }
 0x115   : > { %v395_v43 = vsel %vm393_vm11, %v383_v47, 2102212464  ;;  %v399_v56 = vsel %vm393_vm11, %v386_v53, 920167782  ;;  %v521_v58 = vadd.s32 %v520_v55, %v516_v45  ;;  %v394_v60 = vsel %vm390_vm7, %v374_v33, %v377_v30 }
 0x116   : > { %v400_v61 = vsel %vm392_vm10, %v383_v47, %v399_v56  ;;  %v403_v62 = vsel %vm393_vm11, %v389_v54, 1326507024  ;;  %v396_v63 = vsel %vm392_vm10, %v380_v31, %v395_v43  ;;  %vm678_vm12 = vcmp.gt.s32.totalorder %v1851_v44, 0 }
 0x117   : > { %v401_v0 = vsel %vm391_vm9, %v398_v36, %v400_v61  ;;  %v404_v1 = vsel %vm392_vm10, %v386_v53, %v403_v62  ;;  %v522_v2 = vadd.s32 536870912, %v521_v58  ;;  %v679_v8 = vsel %vm678_vm12, %v1851_v44, 0 }
 0x118   : > { %v405_v3 = vsel %vm391_vm9, %v402_v57, %v404_v1  ;;  %v1912_v4 = vmul.u32.u64.low %v1844_v38, %v401_v0  ;;  %v1913_v5 = vmul.u32.u64.high %v1844_v38, %v401_v0, %v1912_v4  ;;  %v564_v9 = vand.u32 2147483647, %v1836_v22  ;;  %v256_v1 = vld [vmem:[%s1904_s11 + $0x28] sm:$0xff] }
 0x119   : > { %v1917_v6 = vmul.u32.u64.low %v1844_v38, %v405_v3  ;;  %v1918_v7 = vmul.u32.u64.high %v1844_v38, %v405_v3, %v1917_v6  ;;  %v1922_v12 = vshrl.u32 %v522_v2, 30  ;;  %v397_v15 = vsel %vm391_vm9, %v394_v60, %v396_v63  ;;  %v255_v60 = vld [vmem:[%s1904_s11 + $0x20] sm:$0xff] }
 0x11a   : > { %v675_v16 = vor.u32 8388608, %v1848_v39  ;;  %v681_v17 = vand.u32 31, %v679_v8  ;;  %v416_v23 = vadd.s32 1, %v1913_v5  ;;  %v1720_v25 = vmov 0  }
 0x11b   : > { %v524_v21 = vshll.u32 %v1922_v12, 30  ;;  %1580 = vset.pattern.permute.xlu0 %v1720_v25  ;;  %1581 = vset.pattern.permute.xlu1 %v1720_v25  ;;  %v413_v44 = vmul.u32 %v1844_v38, %v397_v15  ;;  %vm415_vm13 = vc.u32 %v1918_v7, %v1912_v4  ;;  %v567_v37 = vand.u32 2139095040, %v1836_v22 }
 0x11c   : > { %v682_v24 = vsub.s32 32, %v681_v17  ;;  %v1937_v39 = vand.u32 8388607, %v564_v9  ;;  %776 = vperm.xlu0 %1580, %v251_v18   ;;  %v417_v30 = vsel %vm415_vm13, %v416_v23, %v1913_v5  ;;  %v1942_v31 = vshrl.u32 %v679_v8, 5  ;;  %786 = vperm.xlu1 %1581, %v253_v19   ;;  %v258_v23 = vld [vmem:[%s1904_s11 + $0x38] sm:$0xff] }
 0x11d   : > { %v1939_v28 = vsub.s32 %v521_v58, %v524_v21  ;;  %v1944_v32 = vshll.u32 %v675_v16, 8  ;;  %v418_v38 = vadd.s32 %v417_v30, %v413_v44  ;;  %v684_v33 = vshll.u32 %v1714_v41, %v681_v17 }
 0x11e   : > { %v685_v35 = vshrl.u32 %v1715_v46, %v682_v24  ;;  %v688_v40 = vshrl.u32 %v1716_v48, %v682_v24  ;;  %v687_v47 = vshll.u32 %v1715_v46, %v681_v17  ;;  %v690_v49 = vshll.u32 %v1716_v48, %v681_v17 }
 0x11f   : > { %v527_v45 = vsub.s32 0, %v1939_v28  ;;  %v691_v51 = vshrl.u32 %v1717_v50, %v682_v24  ;;  %v419_v53 = vadd.s32 536870912, %v418_v38  ;;  %v693_v36 = vshll.u32 %v1717_v50, %v681_v17 }
 0x120   : > { %v686_v54 = vor.u32 %v685_v35, %v684_v33  ;;  %v694_v55 = vshrl.u32 %v1718_v52, %v682_v24  ;;  %781 = vperm.xlu0 %1580, %v252_v34   ;;  %v689_v56 = vor.u32 %v688_v40, %v687_v47  ;;  %v697_v58 = vshrl.u32 %v1719_v59, %v682_v24 }
 0x121   : > { %v1352_v43 = vmin.u32 %v527_v45, %v1939_v28  ;;  %v692_v57 = vor.u32 %v691_v51, %v690_v49  ;;  %791 = vperm.xlu1 %1581, %v254_v42   ;;  %v1960_v61 = vshrl.u32 %v419_v53, 30  ;;  %v696_v63 = vshll.u32 %v1718_v52, %v681_v17  ;;  %v257_v17 = vld [vmem:[%s1904_s11 + $0x30] sm:$0xff]  ;;  %v259_v45 = vld [vmem:[%s1904_s11 + $0x40] sm:$0xff] }
 0x122   : > { %v695_v62 = vor.u32 %v694_v55, %v693_v36  ;;  %v568_v0 = vshrl.u32 %v567_v37, 23  ;;  %v517_v2 = vadd.s32 %v1880_v27, %v1877_v26  ;;  %v683_v5 = vshrl.u32 %v1714_v41, %v682_v24 }
 0x123   : > { %v529_v3 = vclz %v1352_v43  ;;  %vm699_vm14 = vcmp.lt.s32.totalorder %v1942_v31, 1  ;;  %v421_v6 = vshll.u32 %v1960_v61, 30  ;;  %v698_v8 = vor.u32 %v697_v58, %v696_v63 }
 0x124   : > { %vm701_vm15 = vcmp.lt.s32.totalorder %v1942_v31, 3  ;;  %vm702_vm1 = vcmp.lt.s32.totalorder %v1942_v31, 4  ;;  %960 = vperm.xlu0 %1580, %v255_v60   ;;  %v707_v26 = vsel %vm699_vm14, %v686_v54, %v689_v56  ;;  %vm700_vm2 = vcmp.lt.s32.totalorder %v1942_v31, 2 }
 0x125   : > { %v1353_v15 = vadd.s32 4294967294, %v529_v3  ;;  %v704_v16 = vsel %vm702_vm1, %v692_v57, 2102212464  ;;  %v708_v27 = vsel %vm702_vm1, %v695_v62, 920167782  ;;  %965 = vperm.xlu1 %1581, %v256_v1   ;;  %v1978_v18 = vsub.s32 %v418_v38, %v421_v6 }
 0x126   : > { %v709_v19 = vsel %vm701_vm15, %v692_v57, %v708_v27  ;;  %v1355_v21 = vadd.s32 4294967169, %v568_v0  ;;  %v703_v24 = vsel %vm699_vm14, %v683_v5, %v686_v54  ;;  %v711_v44 = vsel %vm699_vm14, %v689_v56, %v692_v57 }
 0x127   : > { %vm1354_vm3 = vcmp.lt.s32.totalorder %v1353_v15, 0  ;;  %v710_v25 = vsel %vm700_vm2, %v707_v26, %v709_v19  ;;  %v424_v30 = vsub.s32 0, %v1978_v18  ;;  %v705_v34 = vsel %vm701_vm15, %v689_v56, %v704_v16 }
 0x128   : > { %v532_v37 = vsel %vm1354_vm3, 0, %v1353_v15  ;;  %v712_v38 = vsel %vm702_vm1, %v698_v8, 1326507024  ;;  %970 = vperm.xlu0 %1580, %v257_v17   ;;  %v2003_v51 = vmul.u32.u64.low %v1944_v32, %v710_v25  ;;  %v2004_v53 = vmul.u32.u64.high %v1944_v32, %v710_v25, %v2003_v51 }
 0x129   : > { %v533_v33 = vsub.s32 32, %v532_v37  ;;  %v534_v35 = vshll.u32 %v1939_v28, %v532_v37  ;;  %v537_v40 = vsub.s32 4294967266, %v532_v37  ;;  %v713_v42 = vsel %vm701_vm15, %v695_v62, %v712_v38  ;;  %975 = vperm.xlu1 %1581, %v258_v23  }
 0x12a   : > { %v1348_v47 = vmin.u32 %v424_v30, %v1978_v18  ;;  %v714_v49 = vsel %vm700_vm2, %v711_v44, %v713_v42  ;;  %vm463_vm4 = vcmp.lt.s32.totalorder %v1822_v10, 0  ;;  %v706_v56 = vsel %vm700_vm2, %v703_v24, %v705_v34 }
 0x12b   : > { %v535_v54 = vshrl.u32 %v517_v2, %v533_v33  ;;  %v538_v36 = vadd.s32 127, %v537_v40  ;;  %v2008_v28 = vmul.u32.u64.low %v1944_v32, %v714_v49  ;;  %v2009_v55 = vmul.u32.u64.high %v1944_v32, %v714_v49, %v2008_v28 }
 0x12c   : > { %v426_v43 = vclz %v1348_v47  ;;  %v574_v57 = vadd.s32 1, %v1355_v21  ;;  %1143 = vperm.xlu0 %1580, %v259_v45   ;;  %vm360_vm5 = vcmp.lt.s32.totalorder %v1826_v13, 0  ;;  %v572_v62 = vor.u32 8388608, %v1937_v39 }
 0x12d   : > { %v536_v58 = vor.u32 %v535_v54, %v534_v35  ;;  %v539_v60 = vshll.u32 %v538_v36, 23  ;;  %v547_v63 = vsub.s32 4, %v1922_v12  ;;  %v725_v1 = vadd.s32 1, %v2004_v53 }
 0x12e   : > { %v1349_v0 = vadd.s32 4294967294, %v426_v43  ;;  %vm575_vm6 = vcmp.gt.s32.totalorder %v574_v57, 0  ;;  %v414_v3 = vadd.s32 %v1912_v4, %v1918_v7  ;;  %v722_v31 = vmul.u32 %v1944_v32, %v706_v56 }
 0x12f   : > { %v540_v2 = vor.u32 4788187, %v539_v60  ;;  %vm724_vm7 = vc.u32 %v2009_v55, %v2003_v51  ;;  %v444_v5 = vsub.s32 4, %v1960_v61  ;;  %v576_v6 = vsel %vm575_vm6, %v574_v57, 0 }
 0x130   : > { %vm1350_vm8 = vcmp.lt.s32.totalorder %v1349_v0, 0  ;;  %v726_v39 = vsel %vm724_vm7, %v725_v1, %v2004_v53  ;;  %v543_v15 = vcvt.s32.f32 %v536_v58  ;;  %v2028_v27 = vsel %vm463_vm4, %v547_v63, %v1922_v12 }
 0x131   : > { %v541_v8 = vand.u32 2147483647, %v540_v2  ;;  %v429_v16 = vsel %vm1350_vm8, 0, %v1349_v0  ;;  %v727_v26 = vadd.s32 %v726_v39, %v722_v31  ;;  %v578_v32 = vand.u32 31, %v576_v6 }
 0x132   : > { %v430_v4 = vsub.s32 32, %v429_v16  ;;  %v434_v7 = vsub.s32 4294967266, %v429_v16  ;;  %vm2032_vm9 = vcmp.le.f32.partialorder %v461_v11, 0.7853982  ;;  %v2036_v23 = vshrl.u32 %v576_v6, 5 }
 0x133   : > { %v544_v19 = vmul.f32 %v543_v15, %v541_v8  ;;  %v728_v21 = vadd.s32 536870912, %v727_v26  ;;  %v431_v24 = vshll.u32 %v1978_v18, %v429_v16  ;;  %v579_v37 = vsub.s32 32, %v578_v32 }
 0x134   : > { %v432_v25 = vshrl.u32 %v414_v3, %v430_v4  ;;  %v435_v44 = vadd.s32 127, %v434_v7  ;;  %v550_v30 = vsel %vm2032_vm9, 0, %v2028_v27  ;;  %v2045_v11 = vsel %vm360_vm5, %v444_v5, %v1960_v61 }
 0x135   : > { %v545_v12 = vxor.u32 2147483648, %v544_v19  ;;  %v2047_v34 = vshrl.u32 %v728_v21, 30  ;;  %v582_v35 = vshrl.u32 %v1715_v46, %v579_v37  ;;  %v2050_v18 = vshll.u32 %v572_v62, 8 }
 0x136   : > { %v433_v38 = vor.u32 %v432_v25, %v431_v24  ;;  %v436_v33 = vshll.u32 %v435_v44, 23  ;;  %v585_v45 = vshrl.u32 %v1716_v48, %v579_v37  ;;  %vm596_vm10 = vcmp.lt.s32.totalorder %v2036_v23, 1 }
 0x137   : > { %v546_v40 = vsel %vm463_vm4, %v545_v12, %v544_v19  ;;  %v730_v42 = vshll.u32 %v2047_v34, 30  ;;  %vm2062_vm11 = vcmp.le.f32.partialorder %v358_v14, 0.7853982  ;;  %v581_v53 = vshll.u32 %v1714_v41, %v578_v32 }
 0x138   : > { %v549_v61 = vsel %vm2032_vm9, %v1822_v10, %v546_v40  ;;  %v437_v49 = vor.u32 4788187, %v436_v33  ;;  %v584_v54 = vshll.u32 %v1715_v46, %v578_v32  ;;  %vm597_vm12 = vcmp.lt.s32.totalorder %v2036_v23, 2 }
 0x139   : > { %1582 = vcosq.f32 %v549_v61  ;;  %v440_v36 = vcvt.s32.f32 %v433_v38  ;;  %v2069_v28 = vsub.s32 %v727_v26, %v730_v42  ;;  %v587_v43 = vshll.u32 %v1716_v48, %v578_v32 }
 0x13a   : > { %1584 = vsinq.f32 %v549_v61  ;;  %v438_v56 = vand.u32 2147483647, %v437_v49  ;;  %v583_v57 = vor.u32 %v582_v35, %v581_v53  ;;  %v588_v14 = vshrl.u32 %v1717_v50, %v579_v37 }
 0x13b   : > { %v733_v58 = vsub.s32 0, %v2069_v28  ;;  %v586_v60 = vor.u32 %v585_v45, %v584_v54  ;;  %v590_v62 = vshll.u32 %v1717_v50, %v578_v32  ;;  %v591_v46 = vshrl.u32 %v1718_v52, %v579_v37 }
 0x13c   : > { %v441_v63 = vmul.f32 %v440_v36, %v438_v56  ;;  %v589_v0 = vor.u32 %v588_v14, %v587_v43  ;;  %v593_v1 = vshll.u32 %v1718_v52, %v578_v32  ;;  %v594_v2 = vshrl.u32 %v1719_v59, %v579_v37 }
 0x13d   : > { %v1360_v48 = vmin.u32 %v733_v58, %v2069_v28  ;;  %v580_v3 = vshrl.u32 %v1714_v41, %v579_v37  ;;  %v592_v31 = vor.u32 %v591_v46, %v590_v62  ;;  %vm599_vm13 = vcmp.lt.s32.totalorder %v2036_v23, 4 }
 0x13e   : > { %v442_v5 = vxor.u32 2147483648, %v441_v63  ;;  %v595_v39 = vor.u32 %v594_v2, %v593_v1  ;;  %vm598_vm14 = vcmp.lt.s32.totalorder %v2036_v23, 3  ;;  %v601_v50 = vsel %vm599_vm13, %v589_v0, 2102212464 }
 0x13f   : > { %v735_v6 = vclz %v1360_v48  ;;  %v600_v52 = vsel %vm596_vm10, %v580_v3, %v583_v57  ;;  %v604_v59 = vsel %vm596_vm10, %v583_v57, %v586_v60  ;;  %v605_v41 = vsel %vm599_vm13, %v592_v31, 920167782 }
 0x140   : > { %v443_v8 = vsel %vm360_vm5, %v442_v5, %v441_v63  ;;  %v602_v15 = vsel %vm598_vm14, %v586_v60, %v601_v50  ;;  %v606_v16 = vsel %vm598_vm14, %v589_v0, %v605_v41  ;;  %v608_v26 = vsel %vm596_vm10, %v586_v60, %v589_v0 }
 0x141   : > { %v446_v27 = vsel %vm2062_vm11, %v1826_v13, %v443_v8  ;;  %v1361_v4 = vadd.s32 4294967294, %v735_v6  ;;  %v607_v7 = vsel %vm597_vm12, %v604_v59, %v606_v16  ;;  %v609_v32 = vsel %vm599_vm13, %v595_v39, 1326507024 }
 0x142   : > { %1586 = vcosq.f32 %v446_v27  ;;  %v610_v17 = vsel %vm598_vm14, %v592_v31, %v609_v32  ;;  %v2102_v19 = vmul.u32.u64.low %v2050_v18, %v607_v7  ;;  %v2103_v21 = vmul.u32.u64.high %v2050_v18, %v607_v7, %v2102_v19 }
 0x143   : > { %v1583_v24 = vpop.eup %1582  ;;  %1588 = vsinq.f32 %v446_v27  ;;  %vm1362_vm15 = vcmp.lt.s32.totalorder %v1361_v4, 0  ;;  %v611_v25 = vsel %vm597_vm12, %v608_v26, %v610_v17  ;;  %v554_v44 = vand.u32 3, %v550_v30 }
 0x144   : > { %v1585_v37 = vpop.eup %1584  ;;  %v738_v12 = vsel %vm1362_vm15, 0, %v1361_v4  ;;  %v2109_v38 = vmul.u32.u64.low %v2050_v18, %v611_v25  ;;  %v2110_v33 = vmul.u32.u64.high %v2050_v18, %v611_v25, %v2109_v38  ;;  %v603_v40 = vsel %vm597_vm12, %v600_v52, %v602_v15 }
 0x145   : > { %v743_v35 = vsub.s32 4294967266, %v738_v12  ;;  %v447_v42 = vsel %vm2062_vm11, 0, %v2045_v11  ;;  %v739_v45 = vsub.s32 32, %v738_v12  ;;  %v622_v61 = vadd.s32 1, %v2103_v21 }
 0x146   : > { %v557_v49 = vxor.u32 2147483648, %v1585_v37  ;;  %v723_v30 = vadd.s32 %v2003_v51, %v2009_v55  ;;  %vm556_vm1 = vcmp.eq.s32.totalorder %v554_v44, 0  ;;  %v560_v54 = vxor.u32 2147483648, %v1583_v24 }
 0x147   : > { %v744_v53 = vadd.s32 127, %v743_v35  ;;  %v619_v36 = vmul.u32 %v2050_v18, %v603_v40  ;;  %vm621_vm2 = vc.u32 %v2110_v33, %v2102_v19  ;;  %vm559_vm3 = vcmp.eq.s32.totalorder %v554_v44, 2 }
 0x148   : > { %v558_v23 = vsel %vm556_vm1, %v1583_v24, %v557_v49  ;;  %v623_v11 = vsel %vm621_vm2, %v622_v61, %v2103_v21  ;;  %v451_v47 = vand.u32 3, %v447_v42  ;;  %v561_v56 = vsel %vm559_vm3, %v560_v54, %v1585_v37 }
 0x149   : > { %v745_v43 = vshll.u32 %v744_v53, 23  ;;  %v741_v57 = vshrl.u32 %v723_v30, %v739_v45  ;;  %v624_v14 = vadd.s32 %v623_v11, %v619_v36  ;;  %vm555_vm4 = vcmp.lt.s32.totalorder %v554_v44, 2 }
 0x14a   : > { %v562_v58 = vsel %vm555_vm4, %v558_v23, %v561_v56  ;;  %v740_v55 = vshll.u32 %v2069_v28, %v738_v12  ;;  %vm456_vm5 = vcmp.eq.s32.totalorder %v451_v47, 2  ;;  %vm553_vm6 = vweird.f32 %v1822_v10 }
 0x14b   : > { %v746_v60 = vor.u32 4788187, %v745_v43  ;;  %v625_v62 = vadd.s32 536870912, %v624_v14  ;;  %v563_v2 = vsel %vm553_vm6, nan, %v562_v58  ;;  %vm453_vm7 = vcmp.eq.s32.totalorder %v451_v47, 0 }
 0x14c   : > { %v1587_v51 = vpop.eup %1586  ;;  %v742_v63 = vor.u32 %v741_v57, %v740_v55  ;;  %vm452_vm8 = vcmp.lt.s32.totalorder %v451_v47, 2  ;;  %vm450_vm9 = vweird.f32 %v1826_v13  ;;  %v2127_v39 = vmul.f32 1.4142135, %v563_v2 }
 0x14d   : > { %v1589_v18 = vpop.eup %1588  ;;  %v457_v46 = vxor.u32 2147483648, %v1587_v51  ;;  %v626_v0 = vshrl.u32 %v625_v62, 30  ;;  %v747_v3 = vand.u32 2147483647, %v746_v60  ;;  %vm669_vm10 = vcmp.lt.s32.totalorder %v1834_v20, 0 }
 0x14e   : > { %v454_v1 = vxor.u32 2147483648, %v1589_v18  ;;  %v749_v50 = vcvt.s32.f32 %v742_v63  ;;  %vm2138_vm12 = vcmp.le.f32.partialorder %v667_v29, 0.7853982  ;;  %v620_v32 = vadd.s32 %v2102_v19, %v2110_v33 }
 0x14f   : > { %v458_v48 = vsel %vm456_vm5, %v457_v46, %v1589_v18  ;;  %v627_v31 = vshll.u32 %v626_v0, 30  ;;  %v753_v35 = vsub.s32 4, %v2047_v34  ;;  %vm566_vm13 = vcmp.lt.s32.totalorder %v1836_v22, 0 }
 0x150   : > { %v455_v5 = vsel %vm453_vm7, %v1587_v51, %v454_v1  ;;  %v750_v10 = vmul.f32 %v749_v50, %v747_v3  ;;  %vm2156_vm14 = vcmp.le.f32.partialorder %v564_v9, 0.7853982  ;;  %v650_v54 = vsub.s32 4, %v626_v0 }
 0x151   : > { %v459_v28 = vsel %vm452_vm8, %v455_v5, %v458_v48  ;;  %v628_v6 = vsub.s32 %v624_v14, %v627_v31  ;;  %v754_v19 = vsel %vm669_vm10, %v753_v35, %v2047_v34  ;;  %vm759_vm3 = vweird.f32 %v1834_v20  ;;  %v244_v31 = vld [vmem:[%s1812_s7 + $0x30] sm:$0xff]  ;;  %v245_v5 = vld [vmem:[%s1812_s7 + $0x38] sm:$0xff] }
 0x152   : > { %v460_v52 = vsel %vm450_vm9, nan, %v459_v28  ;;  %v751_v16 = vxor.u32 2147483648, %v750_v10  ;;  %v756_v49 = vsel %vm2138_vm12, 0, %v754_v19  ;;  %v651_v43 = vsel %vm566_vm13, %v650_v54, %v626_v0  ;;  %v246_v28 = vld [vmem:[%s1812_s7 + $0x40] sm:$0xff] }
 0x153   : > { %v2129_v59 = vmul.f32 1.4142135, %v460_v52  ;;  %v630_v41 = vsub.s32 0, %v628_v6  ;;  %v760_v23 = vand.u32 3, %v756_v49  ;;  %v653_v56 = vsel %vm2156_vm14, 0, %v651_v43  ;;  %1450 = vmatprep.mubr.msk.f32.mxu0 %vm260_vm0, %v246_v28 }
 0x154   : > { %v752_v13 = vsel %vm669_vm10, %v751_v16, %v750_v10  ;;  %v657_v14 = vand.u32 3, %v653_v56  ;;  %vm656_vm7 = vweird.f32 %v1836_v22  ;;  %vm1722_vm8 = vmmov 0  }
 0x155   : > { %v1475_v8 = vpack.c.bf16 %v2127_v39, %v2129_v59  ;;  %v1356_v15 = vmin.u32 %v630_v41, %v628_v6  ;;  %v755_v24 = vsel %vm2138_vm12, %v1834_v20, %v752_v13  ;;  %vm762_vm15 = vcmp.eq.s32.totalorder %v760_v23, 0  ;;  %v243_v20 = vld [vmem:[%s1812_s7 + $0x28] sm:$0xff] }
 0x156   : > { %1590 = vcosq.f32 %v755_v24  ;;  %vm765_vm1 = vcmp.eq.s32.totalorder %v760_v23, 2  ;;  %vm761_vm2 = vcmp.lt.s32.totalorder %v760_v23, 2  ;;  %vm662_vm4 = vcmp.eq.s32.totalorder %v657_v14, 2 }
 0x157   : > { %1476 = vmatprep.subr.bf16.mxu1 %v1475_v8  ;;  %v632_v26 = vclz %v1356_v15  ;;  %1592 = vsinq.f32 %v755_v24  ;;  %vm659_vm5 = vcmp.eq.s32.totalorder %v657_v14, 0  ;;  %vm658_vm6 = vcmp.lt.s32.totalorder %v657_v14, 2 }
 0x158   : > { %1478 = vmatpush3.bf16.msra.mxu1 %v1475_v8 }
 0x159   : > { %v1357_v27 = vadd.s32 4294967294, %v632_v26 }
 0x15b   : > { %vm1358_vm11 = vcmp.lt.s32.totalorder %v1357_v27, 0 }
 0x15c   : > { %v635_v4 = vsel %vm1358_vm11, 0, %v1357_v27 }
 0x15d   : > { %v636_v17 = vsub.s32 32, %v635_v4  ;;  %v640_v21 = vsub.s32 4294967266, %v635_v4  ;;  %v637_v25 = vshll.u32 %v628_v6, %v635_v4 }
 0x15f   : > { %v638_v44 = vshrl.u32 %v620_v32, %v636_v17  ;;  %v641_v37 = vadd.s32 127, %v640_v21 }
 0x160   : > { %v1591_v61 = vpop.eup %1590 }
 0x161   : > { %v639_v12 = vor.u32 %v638_v44, %v637_v25  ;;  %v642_v38 = vshll.u32 %v641_v37, 23  ;;  %v1593_v36 = vpop.eup %1592  ;;  %v766_v47 = vxor.u32 2147483648, %v1591_v61 }
 0x162   : > { %v763_v11 = vxor.u32 2147483648, %v1593_v36 }
 0x163   : > { %v643_v29 = vor.u32 4788187, %v642_v38  ;;  %v646_v42 = vcvt.s32.f32 %v639_v12  ;;  %v767_v57 = vsel %vm765_vm1, %v766_v47, %v1593_v36 }
 0x164   : > { %v764_v9 = vsel %vm762_vm15, %v1591_v61, %v763_v11 }
 0x165   : > { %v644_v40 = vand.u32 2147483647, %v643_v29  ;;  %v768_v58 = vsel %vm761_vm2, %v764_v9, %v767_v57 }
 0x166   : > { %v769_v18 = vsel %vm759_vm3, nan, %v768_v58 }
 0x167   : > { %v647_v45 = vmul.f32 %v646_v42, %v644_v40  ;;  %v773_v1 = vmul.f32 1.4142135, %v769_v18 }
 0x169   : > { %v648_v33 = vxor.u32 2147483648, %v647_v45 }
 0x16b   : > { %v649_v53 = vsel %vm566_vm13, %v648_v33, %v647_v45 }
 0x16c   : > { %v652_v34 = vsel %vm2156_vm14, %v1836_v22, %v649_v53 }
 0x16d   : > { %1594 = vcosq.f32 %v652_v34 }
 0x16e   : > { %1596 = vsinq.f32 %v652_v34 }
 0x177   : > { %v1595_v51 = vpop.eup %1594 }
 0x178   : > { %v1597_v55 = vpop.eup %1596  ;;  %v663_v60 = vxor.u32 2147483648, %v1595_v51 }
 0x179   : > { %v660_v62 = vxor.u32 2147483648, %v1597_v55 }
 0x17a   : > { %v664_v46 = vsel %vm662_vm4, %v663_v60, %v1597_v55 }
 0x17b   : > { %v661_v63 = vsel %vm659_vm5, %v1595_v51, %v660_v62 }
 0x17c   : > { %v665_v0 = vsel %vm658_vm6, %v661_v63, %v664_v46 }
 0x17d   : > { %v666_v2 = vsel %vm656_vm7, nan, %v665_v0 }
 0x17e   : > { %v772_v48 = vmul.f32 1.4142135, %v666_v2 }
 0x180   : > { %v1479_v3 = vpack.c.bf16 %v773_v1, %v772_v48 }
 0x182   : > { %1480 = vmatprep.subr.bf16.mxu1 %v1479_v3 }
 0x183   : > { %1482 = vmatpush3.bf16.msra.mxu1 %v1479_v3 }
 0x186   : > { %1437 = vmatmul.mubr.msk.f32.vlgmr.msra.gmra.mrb[0].mxu1 %vm260_vm0, %v243_v20 }
 0x187   : > { %1439 = vmatprep.mubr.msk.f32.mxu1 %vm260_vm0, %v244_v31 }
 0x18a   : > { %1440 = vmatmul.mubr.msk.f32.gmra.mrb[2].mxu1 %vm260_vm0, %v245_v5 }
 0x19b   : > { %v777_v22 = vpop.permute.xlu0 %776  ;;  %v787_v50 = vpop.permute.xlu1 %786 }
 0x19f   : > { %v782_v6 = vpop.permute.xlu0 %781 }
 0x1a0   : > { %v792_v16 = vpop.permute.xlu1 %791 }
 0x259   : > { %v1438_v52 = vpop.f32.mrb[0].mxu1 }
 0x25a   : > { %v878_v10 = vadd.f32 %v1438_v52, %v782_v6  ;;  %v872_v41 = vpop.f32.mrb[1].mxu1 }
 0x25b   : > { %v873_v8 = vadd.f32 %v872_v41, %v777_v22 }
 0x25c   : > { %v1368_v15 = vmul.f32 -1.442695, %v878_v10 }
 0x25d   : > { %v1367_v26 = vmul.f32 -1.442695, %v873_v8  ;;  %v1441_v27 = vpop.f32.mrb[2].mxu1 }
 0x25e   : > { %1598 = vpow2.f32 %v1368_v15  ;;  %v888_v13 = vadd.f32 %v1441_v27, %v792_v16  ;;  %v882_v4 = vpop.f32.mrb[3].mxu1  ;;  %v247_v16 = vld [vmem:[%s1812_s7 + $0x48] sm:$0xff]  ;;  %v249_v27 = vld [vmem:[%s1812_s7 + $0x58] sm:$0xff] }
 0x25f   : > { %1600 = vpow2.f32 %v1367_v26  ;;  %v883_v7 = vadd.f32 %v882_v4, %v787_v50  ;;  %v248_v26 = vld [vmem:[%s1812_s7 + $0x50] sm:$0xff]  ;;  %v1723_v4 = vmov 0.0  }
 0x260   : > { %v1370_v32 = vmul.f32 -1.442695, %v888_v13  ;;  %1464 = vmatprep.mubr.msk.f32.mxu1 %vm1722_vm8, %v1723_v4 }
 0x261   : > { %v1369_v17 = vmul.f32 -1.442695, %v883_v7 }
 0x262   : > { %1602 = vpow2.f32 %v1370_v32  ;;  %v961_v32 = vpop.permute.xlu0 %960 }
 0x263   : > { %1604 = vpow2.f32 %v1369_v17 }
 0x268   : > { %v1599_v21 = vpop.eup %1598 }
 0x269   : > { %v1601_v24 = vpop.eup %1600  ;;  %v904_v25 = vadd.f32 1.0, %v1599_v21 }
 0x26a   : > { %v903_v44 = vadd.f32 1.0, %v1601_v24 }
 0x26b   : > { %1606 = vrcp.f32 %v904_v25 }
 0x26c   : > { %v1603_v37 = vpop.eup %1602  ;;  %1608 = vrcp.f32 %v903_v44 }
 0x26d   : > { %v1605_v12 = vpop.eup %1604  ;;  %v906_v38 = vadd.f32 1.0, %v1603_v37 }
 0x26e   : > { %v905_v29 = vadd.f32 1.0, %v1605_v12 }
 0x26f   : > { %1610 = vrcp.f32 %v906_v38 }
 0x270   : > { %1612 = vrcp.f32 %v905_v29  ;;  %v971_v29 = vpop.permute.xlu0 %970 }
 0x275   : > { %v1607_v35 = vpop.eup %1606 }
 0x276   : > { %v1609_v40 = vpop.eup %1608  ;;  %v916_v42 = vmul.f32 %v1607_v35, %v878_v10 }
 0x277   : > { %v915_v45 = vmul.f32 %v1609_v40, %v873_v8 }
 0x278   : > { %v2176_v33 = vadd.f32 %v916_v42, %v2127_v39 }
 0x279   : > { %v1611_v19 = vpop.eup %1610  ;;  %v2179_v61 = vadd.f32 %v915_v45, %v2129_v59 }
 0x27a   : > { %v1613_v49 = vpop.eup %1612  ;;  %v918_v30 = vmul.f32 %v1611_v19, %v888_v13  ;;  %v1721_v13 = vmov 0.0|0.0  }
 0x27b   : > { %v917_v53 = vmul.f32 %v1613_v49, %v883_v7  ;;  %v923_v54 = vadd.f32 %v2176_v33, %v2179_v61  ;;  %1491 = vmatprep.subr.bf16.mxu1 %v1721_v13  ;;  %v966_v7 = vpop.permute.xlu1 %965 }
 0x27c   : > { %v2185_v34 = vadd.f32 %v918_v30, %v773_v1 }
 0x27d   : > { %v2183_v36 = vadd.f32 %v917_v53, %v772_v48 }
 0x27f   : > { %v924_v23 = vadd.f32 %v923_v54, %v2183_v36  ;;  %v976_v37 = vpop.permute.xlu1 %975 }
 0x281   : > { %v925_v43 = vadd.f32 %v924_v23, %v2185_v34 }
 0x283   : > { %v926_v11 = vrot.slane %v925_v43, 4 }
 0x285   : > { %v927_v39 = vadd.f32 %v926_v11, %v925_v43 }
 0x287   : > { %v928_v47 = vrot.slane %v927_v39, 2 }
 0x289   : > { %v929_v56 = vadd.f32 %v928_v47, %v927_v39 }
 0x28b   : > { %v930_v59 = vrot.slane %v929_v56, 1 }
 0x28d   : > { %v931_v9 = vadd.f32 %v930_v59, %v929_v56 }
 0x28f   : > { %v933_v57 = vmul.f32 0.03125, %v931_v9 }
 0x291   : > { %v936_v14 = vsub.f32 %v2183_v36, %v933_v57  ;;  %v934_v58 = vsub.f32 %v2179_v61, %v933_v57  ;;  %v935_v51 = vsub.f32 %v2176_v33, %v933_v57  ;;  %v937_v55 = vsub.f32 %v2185_v34, %v933_v57 }
 0x293   : > { %v938_v60 = vmul.f32 %v934_v58, %v934_v58  ;;  %v939_v62 = vmul.f32 %v935_v51, %v935_v51  ;;  %v940_v18 = vmul.f32 %v936_v14, %v936_v14  ;;  %v941_v63 = vmul.f32 %v937_v55, %v937_v55 }
 0x295   : > { %v942_v46 = vadd.f32 %v939_v62, %v938_v60 }
 0x297   : > { %v943_v0 = vadd.f32 %v942_v46, %v940_v18 }
 0x299   : > { %v944_v1 = vadd.f32 %v943_v0, %v941_v63 }
 0x29b   : > { %v945_v2 = vrot.slane %v944_v1, 4 }
 0x29d   : > { %v946_v48 = vadd.f32 %v945_v2, %v944_v1 }
 0x29f   : > { %v947_v3 = vrot.slane %v946_v48, 2 }
 0x2a1   : > { %v948_v20 = vadd.f32 %v947_v3, %v946_v48 }
 0x2a3   : > { %v949_v31 = vrot.slane %v948_v20, 1 }
 0x2a5   : > { %v950_v5 = vadd.f32 %v949_v31, %v948_v20 }
 0x2a7   : > { %v951_v28 = vmul.f32 0.03125, %v950_v5 }
 0x2a9   : > { %v952_v22 = vadd.f32 1e-05, %v951_v28 }
 0x2ab   : > { %1614 = vrsqrt.f32 %v952_v22 }
 0x2b5   : > { %v1615_v50 = vpop.eup %1614 }
 0x2b6   : > { %v954_v6 = vmul.f32 %v1615_v50, %v934_v58  ;;  %v955_v52 = vmul.f32 %v1615_v50, %v935_v51  ;;  %v956_v10 = vmul.f32 %v1615_v50, %v936_v14  ;;  %v957_v41 = vmul.f32 %v1615_v50, %v937_v55 }
 0x2b8   : > { %v1483_v8 = vpack.c.bf16 %v955_v52, %v954_v6  ;;  %v1487_v15 = vpack.c.bf16 %v957_v41, %v956_v10 }
 0x2ba   : > { %1484 = vmatprep.subr.bf16.mxu0 %v1483_v8 }
 0x2bb   : > { %1486 = vmatpush3.bf16.msra.mxu0 %v1483_v8 }
 0x2bc   : > { %1488 = vmatprep.subr.bf16.mxu0 %v1487_v15 }
 0x2bf   : > { %1490 = vmatpush3.bf16.msra.mxu0 %v1487_v15 }
 0x2c2   : > { %1451 = vmatmul.mubr.msk.f32.vlgmr.msra.gmra.mrb[4].mxu0 %vm260_vm0, %v247_v16 }
 0x2c3   : > { %1453 = vmatprep.mubr.msk.f32.mxu0 %vm260_vm0, %v248_v26 }
 0x2c6   : > { %1454 = vmatmul.mubr.msk.f32.gmra.mrb[6].mxu0 %vm260_vm0, %v249_v27 }
 0x395   : > { %v1452_v17 = vpop.f32.mrb[4].mxu0 }
 0x396   : > { %v1062_v21 = vadd.f32 %v1452_v17, %v966_v7  ;;  %v1056_v24 = vpop.f32.mrb[5].mxu0 }
 0x397   : > { %v1057_v25 = vadd.f32 %v1056_v24, %v961_v32 }
 0x398   : > { %v1376_v44 = vmul.f32 -1.442695, %v1062_v21 }
 0x399   : > { %v1375_v12 = vmul.f32 -1.442695, %v1057_v25  ;;  %v1455_v38 = vpop.f32.mrb[6].mxu0 }
 0x39a   : > { %1616 = vpow2.f32 %v1376_v44  ;;  %v1072_v35 = vadd.f32 %v1455_v38, %v976_v37  ;;  %v1066_v40 = vpop.f32.mrb[7].mxu0  ;;  %v250_v38 = vld [vmem:[%s1812_s7 + $0x60] sm:$0xff] }
 0x39b   : > { %1618 = vpow2.f32 %v1375_v12  ;;  %v1067_v42 = vadd.f32 %v1066_v40, %v971_v29  ;;  %v1144_v29 = vpop.permute.xlu0 %1143 }
 0x39c   : > { %v1378_v45 = vmul.f32 -1.442695, %v1072_v35 }
 0x39d   : > { %v1377_v19 = vmul.f32 -1.442695, %v1067_v42 }
 0x39e   : > { %1620 = vpow2.f32 %v1378_v45 }
 0x39f   : > { %1622 = vpow2.f32 %v1377_v19 }
 0x3a4   : > { %v1617_v49 = vpop.eup %1616 }
 0x3a5   : > { %v1619_v30 = vpop.eup %1618  ;;  %v1088_v53 = vadd.f32 1.0, %v1617_v49 }
 0x3a6   : > { %v1087_v54 = vadd.f32 1.0, %v1619_v30 }
 0x3a7   : > { %1624 = vrcp.f32 %v1088_v53 }
 0x3a8   : > { %v1621_v23 = vpop.eup %1620  ;;  %1626 = vrcp.f32 %v1087_v54 }
 0x3a9   : > { %v1623_v43 = vpop.eup %1622  ;;  %v1090_v11 = vadd.f32 1.0, %v1621_v23 }
 0x3aa   : > { %v1089_v39 = vadd.f32 1.0, %v1623_v43 }
 0x3ab   : > { %1628 = vrcp.f32 %v1090_v11 }
 0x3ac   : > { %1630 = vrcp.f32 %v1089_v39 }
 0x3b1   : > { %v1625_v47 = vpop.eup %1624 }
 0x3b2   : > { %v1627_v56 = vpop.eup %1626  ;;  %v1100_v59 = vmul.f32 %v1625_v47, %v1062_v21 }
 0x3b3   : > { %v1099_v9 = vmul.f32 %v1627_v56, %v1057_v25 }
 0x3b4   : > { %v1104_v57 = vadd.f32 %v1100_v59, %v2176_v33 }
 0x3b5   : > { %v1629_v14 = vpop.eup %1628  ;;  %v1103_v58 = vadd.f32 %v1099_v9, %v2179_v61 }
 0x3b6   : > { %v1631_v51 = vpop.eup %1630  ;;  %v1102_v60 = vmul.f32 %v1629_v14, %v1072_v35 }
 0x3b7   : > { %v1107_v55 = vadd.f32 %v1104_v57, %v1103_v58  ;;  %v1101_v62 = vmul.f32 %v1631_v51, %v1067_v42 }
 0x3b8   : > { %v1106_v46 = vadd.f32 %v1102_v60, %v2185_v34 }
 0x3b9   : > { %v1105_v18 = vadd.f32 %v1101_v62, %v2183_v36 }
 0x3bb   : > { %v1108_v63 = vadd.f32 %v1107_v55, %v1105_v18 }
 0x3bd   : > { %v1109_v0 = vadd.f32 %v1108_v63, %v1106_v46 }
 0x3bf   : > { %v1110_v1 = vrot.slane %v1109_v0, 4 }
 0x3c1   : > { %v1111_v2 = vadd.f32 %v1110_v1, %v1109_v0 }
 0x3c3   : > { %v1112_v48 = vrot.slane %v1111_v2, 2 }
 0x3c5   : > { %v1113_v3 = vadd.f32 %v1112_v48, %v1111_v2 }
 0x3c7   : > { %v1114_v20 = vrot.slane %v1113_v3, 1 }
 0x3c9   : > { %v1115_v31 = vadd.f32 %v1114_v20, %v1113_v3 }
 0x3cb   : > { %v1116_v33 = vmul.f32 0.03125, %v1115_v31 }
 0x3cd   : > { %v1117_v5 = vsub.f32 %v1103_v58, %v1116_v33  ;;  %v1118_v28 = vsub.f32 %v1104_v57, %v1116_v33  ;;  %v1119_v61 = vsub.f32 %v1105_v18, %v1116_v33  ;;  %v1120_v22 = vsub.f32 %v1106_v46, %v1116_v33 }
 0x3cf   : > { %v1121_v50 = vmul.f32 %v1117_v5, %v1117_v5  ;;  %v1122_v6 = vmul.f32 %v1118_v28, %v1118_v28  ;;  %v1123_v52 = vmul.f32 %v1119_v61, %v1119_v61  ;;  %v1124_v36 = vmul.f32 %v1120_v22, %v1120_v22 }
 0x3d1   : > { %v1125_v10 = vadd.f32 %v1122_v6, %v1121_v50 }
 0x3d3   : > { %v1126_v41 = vadd.f32 %v1125_v10, %v1123_v52 }
 0x3d5   : > { %v1127_v34 = vadd.f32 %v1126_v41, %v1124_v36 }
 0x3d7   : > { %v1128_v8 = vrot.slane %v1127_v34, 4 }
 0x3d9   : > { %v1129_v15 = vadd.f32 %v1128_v8, %v1127_v34 }
 0x3db   : > { %v1130_v16 = vrot.slane %v1129_v15, 2 }
 0x3dd   : > { %v1131_v26 = vadd.f32 %v1130_v16, %v1129_v15 }
 0x3df   : > { %v1132_v27 = vrot.slane %v1131_v26, 1 }
 0x3e1   : > { %v1133_v4 = vadd.f32 %v1132_v27, %v1131_v26 }
 0x3e3   : > { %v1134_v7 = vmul.f32 0.03125, %v1133_v4 }
 0x3e5   : > { %v1135_v32 = vadd.f32 1e-05, %v1134_v7 }
 0x3e7   : > { %1632 = vrsqrt.f32 %v1135_v32 }
 0x3f1   : > { %v1633_v17 = vpop.eup %1632 }
 0x3f2   : > { %v1139_v21 = vmul.f32 %v1633_v17, %v1119_v61  ;;  %v1137_v24 = vmul.f32 %v1633_v17, %v1117_v5  ;;  %v1138_v25 = vmul.f32 %v1633_v17, %v1118_v28  ;;  %v1140_v44 = vmul.f32 %v1633_v17, %v1120_v22 }
 0x3f4   : > { %v1492_v37 = vpack.c.bf16 %v1138_v25, %v1137_v24  ;;  %v1495_v12 = vpack.c.bf16 %v1140_v44, %v1139_v21 }
 0x3f6   : > { %1493 = vmatpush3.bf16.msra.mxu1 %v1492_v37 }
 0x3f7   : > { %1494 = vmatprep.subr.bf16.mxu1 %v1721_v13 }
 0x3fa   : > { %1496 = vmatpush3.bf16.msra.mxu1 %v1495_v12 }
 0x3fd   : > { %1465 = vmatmul.mubr.msk.f32.vlgmr.msra.gmra.mrb[4].mxu1 %vm260_vm0, %v250_v38 }
 0x4d0   : > { %v1215_v35 = vpop.f32.mrb[4].mxu1 }
 0x4d1   : > { %v1216_v40 = vadd.f32 %v1215_v35, %v1144_v29  ;;  %v1466_v42 = vpop.f32.mrb[5].mxu1 }
 0x4d3   : > { %1219 = vst [vmem:[%s215_s23] sm:$0xff] %v1216_v40 }
 0x4d4   : > { %1647 = shalt.err (!%p1644_p5)
}
 0x4d5   : > { %s1648_s7 = scalar_lea.hbm %s2212_s29, 128  ;;  %s1652_s10 = scalar_lea.hbm %s2262_s3, 256 }
 0x4d6   : > { %p1649_p6 = scmp.ne.s32.totalorder %s2212_s29, %s1648_s7  ;;  %p1653_p10 = scmp.lt.u32.totalorder %s2212_s29, %s2262_s3 }
 0x4d7   : > { %p1654_p11 = scmp.lt.u32.totalorder %s1652_s10, %s1648_s7  ;;  %p1656_p13 = scmp.lt.u32.totalorder %s1648_s7, %s2212_s29 }
 0x4d8   : > { %p1650_p7 = pnand %p1649_p6, %p1785_p4 }
 0x4d9   : > { %p1655_p12 = por %p1654_p11, %p1653_p10 }
 0x4da   : > { %p1651_p9 = pneg %p1650_p7 }
 0x4db   : > { %p1657_p0 = por %p1656_p13, %p1655_p12 }
 0x4dd   : > { %p1658_p1 = pnand %p1657_p0, %p1651_p9 }
 0x4df   : > { %1661 = shalt.err (!%p1658_p1)
}
 0x4e0   : > { %1515 = dma.vmem_to_hbm [thread:$0]  (%p1785_p4), %s2214_s26, 128, %s2212_s29, %s1221_s30  }
 0x4e1 PF: > { %p1521_p2 = scmp.ge.s32.totalorder %s1712_s17, 2  ;;  %s1247_s19 = sand.u32 1, %s1692_s12  }
 0x4e2   : > { %s1248_s21 = scalar_lea.sflag [#allocation3], %s1247_s19 }
 0x4e3   : > { %p1518_p3 = pnand %p1521_p2, %p1792_p8 }
 0x4e5   : > { %1687 = dma.done.wait (!%p1518_p3), %s1248_s21, 128  }
 0x4e6   : > { %1689 = vsyncadd (!%p1518_p3), %s1248_s21, 4294967168  ;;  %s16_s17 = sadd.s32 1, %s1712_s17   ;;  %s2273_s12 = smov %s1696_s13 }
 0x4e7   : > { %p13_p5 = scmp.ge.s32.totalorder %s16_s17, 4   ;;  %s2274_s13 = smov %s1700_s14 }
 0x4e8   : > { %s2275_s14 = smov %s1798_s25  ;;  %s2276_s15 = smov %s1708_s16 }
 0x4e9   : > { %s2277_s16 = smov %s2279_s20  ;;  %15 = sbr.rel (!%p13_p5) target bundleno = 4 (0x4), region = 73 }
 0x4f0   :  { %1253 = vsyncpa [#allocation3], 1 }
 0x4f1   :  { %1255 = vsyncpa [#allocation3 + $0x1], 1 }

</bundles_post_ra>
